<compile_context>
chip_gen: v7x
topology: tpu7x:2x2x1
jax: 0.10.0
libtpu: 0.0.40
codegen_flags: <defaults>
</compile_context>

<pallas_src>
import numpy as np
import jax
import jax.numpy as jnp
from jax.experimental import pallas as pl
from jax.experimental.pallas import tpu as pltpu


def _separable_taps(filter_size: int):
    """1-D taps t such that the L2pooling filter g == t[:,None]*t[None,:] exactly."""
    a = np.hanning(filter_size)[1:-1]          # filter_size=5 -> [0.5, 1.0, 0.5]
    t = (a / a.sum()).astype(np.float32)       # g = a⊗a / sum(a⊗a) = (a/Σa) ⊗ (a/Σa)
    return [float(v) for v in t]


def _divisors(n: int):
    ds = set()
    i = 1
    while i * i <= n:
        if n % i == 0:
            ds.add(i)
            ds.add(n // i)
        i += 1
    return sorted(ds)


def _pick_tiles(B: int, C: int, HW: int, itemsize: int, target_bytes: int = 2 << 20):
    """Pick (batch_tile, channel_tile).

    * channel tile tc | C and (tc % 8 == 0 or tc == C)  -> sublane-dense, no ragged block,
      contiguous NCHW slab per DMA.
    * batch tile tb | B packs several images per block so the tiny late-stage maps still
      form ~2 MiB blocks (amortizes per-grid-step overhead, bigger DMAs).
    * guarantee >= 2 parallel blocks when possible so both v7x TensorCores are busy.
    """
    per_chan = HW * max(itemsize, 4)           # f32 working copies dominate VMEM
    c_cands = [d for d in _divisors(C) if d == C or d % 8 == 0]
    fitting = [d for d in c_cands if d * per_chan <= target_bytes]
    tc = max(fitting) if fitting else min(c_cands)

    b_fitting = [d for d in _divisors(B) if d * tc * per_chan <= target_bytes]
    tb = max(b_fitting) if b_fitting else 1

    if (B // tb) * (C // tc) < 2:              # one block only -> split for megacore
        if B > 1:
            tb = max(d for d in _divisors(B) if d <= B // 2)
        else:
            smaller = [d for d in c_cands if d < C]
            if smaller:
                tc = max(smaller)
    return tb, tc


def _l2pool_kernel_factory(taps, pad: int, W: int, HW: int):
    k = len(taps)

    def kernel(x_ref, o_ref):
        # x_ref / o_ref: (TB, tc, H*W) -- channels on sublanes, flattened spatial on lanes.
        x = x_ref[...]
        if x.dtype != jnp.float32:
            x = x.astype(jnp.float32)
        x2 = x * x                                              # input ** 2

        # Tiny per-lane metadata (1,1,HW): column index within each image row.
        p = jax.lax.broadcasted_iota(jnp.int32, (1, 1, HW), 2)
        w = p % W

        # ---- horizontal pass: neighbors are +-1 in flattened space; the zero-padding
        # mask is folded into the per-lane tap coefficient (no extra selects).
        h = taps[pad] * x2
        for j in range(k):
            off = j - pad
            if off == 0:
                continue
            rolled = pltpu.roll(x2, shift=(-off) % HW, axis=2)   # rolled[p] = x2[p + off]
            if off > 0:
                coef = jnp.where(w < W - off, taps[j], 0.0).astype(jnp.float32)
            else:
                coef = jnp.where(w >= -off, taps[j], 0.0).astype(jnp.float32)
            h = h + coef * rolled

        # ---- vertical pass: neighbors are +-W in flattened space; only the first/last
        # rows of the whole plane need zeroed coefficients.
        acc = taps[pad] * h
        for i in range(k):
            off = i - pad
            if off == 0:
                continue
            rolled = pltpu.roll(h, shift=(-off * W) % HW, axis=2)  # rolled[p] = h[p + off*W]
            if off > 0:
                coef = jnp.where(p < HW - off * W, taps[i], 0.0).astype(jnp.float32)
            else:
                coef = jnp.where(p >= -off * W, taps[i], 0.0).astype(jnp.float32)
            acc = acc + coef * rolled

        o_ref[...] = jnp.sqrt(acc + 1e-12).astype(o_ref.dtype)

    return kernel


def l2pooling(x: jax.Array, filter_size: int = 5, stride: int = 1) -> jax.Array:
    """Pallas implementation of L2pooling.forward.  x is NCHW (like PyTorch)."""
    B, C, H, W = x.shape
    k = filter_size - 2
    pad = (filter_size - 2) // 2
    assert k >= 1 and k % 2 == 1 and pad == (k - 1) // 2, "odd filter_size >= 3 required"

    taps = _separable_taps(filter_size)
    HW = H * W

    # Metadata-only reshape (row-major collapse of the last two dims): no HBM traffic,
    # unlike the NCHW<->NHWC transposes of the previous version.
    x_flat = x.reshape(B, C, HW)

    tb, tc = _pick_tiles(B, C, HW, x.dtype.itemsize)
    grid = (B // tb, C // tc)

    # Footprint-derived VMEM limit: double-buffered in+out blocks + ~6 full-block f32
    # temporaries, clamped to stay comfortably inside v7x's 64 MiB physical VMEM.
    # TODO(synk): for enormous single-channel planes (per-channel slab >> 2 MiB) add
    # H-tiling with a 1-row halo instead of relying on a bigger vmem limit.
    blk_io = tb * tc * HW * x.dtype.itemsize
    blk_f32 = tb * tc * HW * 4
    vmem_est = 4 * blk_io + 6 * blk_f32 + (1 << 20)
    vmem_limit = int(min(max(vmem_est, 16 << 20), 40 << 20))

    kernel = _l2pool_kernel_factory(taps, pad, W, HW)

    # NOTE: pipeline_mode=pl.Buffered(3) on these specs could deepen prefetch for the
    # sub-MiB late-stage blocks; left at the default depth for maximal lowering
    # portability across JAX versions.
    out_flat = pl.pallas_call(
        kernel,
        out_shape=jax.ShapeDtypeStruct((B, C, HW), x.dtype),
        grid_spec=pltpu.PrefetchScalarGridSpec(
            num_scalar_prefetch=0,
            grid=grid,
            in_specs=[pl.BlockSpec((tb, tc, HW), lambda b, c: (b, c, 0))],
            out_specs=pl.BlockSpec((tb, tc, HW), lambda b, c: (b, c, 0)),
        ),
        compiler_params=pltpu.CompilerParams(
            dimension_semantics=("parallel", "parallel"),
            vmem_limit_bytes=vmem_limit,
        ),
    )(x_flat)

    out = out_flat.reshape(B, C, H, W)         # metadata-only reshape back
    if stride != 1:
        # TODO(synk): fuse the stride decimation into the kernel's output store
        # (lane-strided / gathered extraction).  Kept in the wrapper because support for
        # lane-strided value extraction is Mosaic-version dependent and a kernel that
        # fails to lower is worth nothing; the decimated stride-1 result is numerically
        # identical to the strided conv.
        out = out[:, :, ::stride, ::stride]
    return out


def _reference(x: jax.Array, filter_size: int = 5, stride: int = 1) -> jax.Array:
    """Pure-JAX reference mirroring F.conv2d(groups=C) on the squared input."""
    B, C, H, W = x.shape
    pad = (filter_size - 2) // 2
    a = np.hanning(filter_size)[1:-1]
    g = (a[:, None] * a[None, :]).astype(np.float32)
    g = g / g.sum()
    w = jnp.broadcast_to(jnp.asarray(g)[None, None, :, :], (C, 1, g.shape[0], g.shape[1]))
    x2 = x.astype(jnp.float32) ** 2
    out = jax.lax.conv_general_dilated(
        x2, w, window_strides=(stride, stride), padding=[(pad, pad), (pad, pad)],
        dimension_numbers=("NCHW", "OIHW", "NCHW"), feature_group_count=C)
    return jnp.sqrt(out + 1e-12).astype(x.dtype)


if __name__ == "__main__":
    key = jax.random.PRNGKey(0)
    x = jax.random.normal(key, (2, 4, 16, 16), dtype=jnp.float32)

    # stride=1 (module signature default)
    out = jax.block_until_ready(l2pooling(x))
    ref = _reference(x)
    assert out.shape == ref.shape == (2, 4, 16, 16)
    np.testing.assert_allclose(np.asarray(out), np.asarray(ref), rtol=1e-5, atol=1e-6)

    # stride=2 (as used by TReS in practice)
    out2 = jax.block_until_ready(l2pooling(x, stride=2))
    ref2 = _reference(x, stride=2)
    np.testing.assert_allclose(np.asarray(out2), np.asarray(ref2), rtol=1e-5, atol=1e-6)

    print("KERNEL_OK")
</pallas_src>

<mosaic_0001>
module attributes {stable_mosaic.version = 11 : i64} {
  func.func @kernel(%arg0: i32, %arg1: i32, %arg2: memref<1x4x256xf32, #tpu.memory_space<vmem>>, %arg3: memref<1x4x256xf32, #tpu.memory_space<vmem>>) attributes {dimension_semantics = [#tpu.dimension_semantics<parallel>, #tpu.dimension_semantics<parallel>], iteration_bounds = array<i64: 2, 1>, scalar_prefetch = 0 : i64, scratch_operands = 0 : i64, tpu.core_type = #tpu.core_type<tc>, window_params = [{transform_indices = @transform_0, window_bounds = array<i64: 1, 4, 256>}, {transform_indices = @transform_1, window_bounds = array<i64: 1, 4, 256>}]} {
    %c0 = arith.constant 0 : index
    %c0_0 = arith.constant 0 : index
    %c0_1 = arith.constant 0 : index
    %0 = vector.load %arg2[%c0, %c0_0, %c0_1] : memref<1x4x256xf32, #tpu.memory_space<vmem>>, vector<1x4x256xf32>
    %1 = arith.mulf %0, %0 : vector<1x4x256xf32>
    %2 = tpu.iota {dimensions = array<i32: 2>} : vector<1x1x256xi32>
    %c16_i32 = arith.constant 16 : i32
    %c0_i32 = arith.constant 0 : i32
    %3 = arith.cmpi eq, %c16_i32, %c0_i32 : i32
    %c1_i32 = arith.constant 1 : i32
    %4 = arith.select %3, %c1_i32, %c16_i32 : i32
    %5 = vector.broadcast %4 : i32 to vector<1x1x256xi32>
    %6 = arith.remsi %2, %5 : vector<1x1x256xi32>
    %c0_i32_2 = arith.constant 0 : i32
    %7 = vector.broadcast %c0_i32_2 : i32 to vector<1x1x256xi32>
    %8 = arith.cmpi ne, %6, %7 : vector<1x1x256xi32>
    %c0_i32_3 = arith.constant 0 : i32
    %9 = vector.broadcast %c0_i32_3 : i32 to vector<1x1x256xi32>
    %10 = arith.cmpi slt, %6, %9 : vector<1x1x256xi32>
    %c0_i32_4 = arith.constant 0 : i32
    %11 = arith.cmpi slt, %4, %c0_i32_4 : i32
    %12 = vector.broadcast %11 : i1 to vector<1x1x256xi1>
    %13 = vector.broadcast %12 : vector<1x1x256xi1> to vector<1x1x256xi1>
    %14 = arith.xori %10, %13 : vector<1x1x256xi1>
    %15 = arith.andi %14, %8 : vector<1x1x256xi1>
    %16 = vector.broadcast %4 : i32 to vector<1x1x256xi32>
    %17 = arith.addi %6, %16 : vector<1x1x256xi32>
    %18 = arith.select %15, %17, %6 : vector<1x1x256xi1>, vector<1x1x256xi32>
    %cst = arith.constant 5.000000e-01 : f32
    %19 = vector.broadcast %cst : f32 to vector<1x4x256xf32>
    %20 = arith.mulf %19, %1 : vector<1x4x256xf32>
    %c1_i32_5 = arith.constant 1 : i32
    %21 = tpu.dynamic_rotate %1 by %c1_i32_5 dim 2 : vector<1x4x256xf32>, i32 -> vector<1x4x256xf32>
    %c1_i32_6 = arith.constant 1 : i32
    %22 = vector.broadcast %c1_i32_6 : i32 to vector<1x1x256xi32>
    %23 = arith.cmpi sge, %18, %22 : vector<1x1x256xi32>
    %cst_7 = arith.constant 2.500000e-01 : f32
    %cst_8 = arith.constant 0.000000e+00 : f32
    %24 = vector.broadcast %cst_7 : f32 to vector<1x1x256xf32>
    %25 = vector.broadcast %cst_8 : f32 to vector<1x1x256xf32>
    %26 = arith.select %23, %24, %25 : vector<1x1x256xi1>, vector<1x1x256xf32>
    %27 = vector.broadcast %26 : vector<1x1x256xf32> to vector<1x4x256xf32>
    %28 = arith.mulf %27, %21 : vector<1x4x256xf32>
    %29 = arith.addf %20, %28 : vector<1x4x256xf32>
    %c255_i32 = arith.constant 255 : i32
    %30 = tpu.dynamic_rotate %1 by %c255_i32 dim 2 : vector<1x4x256xf32>, i32 -> vector<1x4x256xf32>
    %c15_i32 = arith.constant 15 : i32
    %31 = vector.broadcast %c15_i32 : i32 to vector<1x1x256xi32>
    %32 = arith.cmpi slt, %18, %31 : vector<1x1x256xi32>
    %cst_9 = arith.constant 2.500000e-01 : f32
    %cst_10 = arith.constant 0.000000e+00 : f32
    %33 = vector.broadcast %cst_9 : f32 to vector<1x1x256xf32>
    %34 = vector.broadcast %cst_10 : f32 to vector<1x1x256xf32>
    %35 = arith.select %32, %33, %34 : vector<1x1x256xi1>, vector<1x1x256xf32>
    %36 = vector.broadcast %35 : vector<1x1x256xf32> to vector<1x4x256xf32>
    %37 = arith.mulf %36, %30 : vector<1x4x256xf32>
    %38 = arith.addf %29, %37 : vector<1x4x256xf32>
    %cst_11 = arith.constant 5.000000e-01 : f32
    %39 = vector.broadcast %cst_11 : f32 to vector<1x4x256xf32>
    %40 = arith.mulf %39, %38 : vector<1x4x256xf32>
    %c16_i32_12 = arith.constant 16 : i32
    %41 = tpu.dynamic_rotate %38 by %c16_i32_12 dim 2 : vector<1x4x256xf32>, i32 -> vector<1x4x256xf32>
    %c16_i32_13 = arith.constant 16 : i32
    %42 = vector.broadcast %c16_i32_13 : i32 to vector<1x1x256xi32>
    %43 = arith.cmpi sge, %2, %42 : vector<1x1x256xi32>
    %cst_14 = arith.constant 2.500000e-01 : f32
    %cst_15 = arith.constant 0.000000e+00 : f32
    %44 = vector.broadcast %cst_14 : f32 to vector<1x1x256xf32>
    %45 = vector.broadcast %cst_15 : f32 to vector<1x1x256xf32>
    %46 = arith.select %43, %44, %45 : vector<1x1x256xi1>, vector<1x1x256xf32>
    %47 = vector.broadcast %46 : vector<1x1x256xf32> to vector<1x4x256xf32>
    %48 = arith.mulf %47, %41 : vector<1x4x256xf32>
    %49 = arith.addf %40, %48 : vector<1x4x256xf32>
    %c240_i32 = arith.constant 240 : i32
    %50 = tpu.dynamic_rotate %38 by %c240_i32 dim 2 : vector<1x4x256xf32>, i32 -> vector<1x4x256xf32>
    %c240_i32_16 = arith.constant 240 : i32
    %51 = vector.broadcast %c240_i32_16 : i32 to vector<1x1x256xi32>
    %52 = arith.cmpi slt, %2, %51 : vector<1x1x256xi32>
    %cst_17 = arith.constant 2.500000e-01 : f32
    %cst_18 = arith.constant 0.000000e+00 : f32
    %53 = vector.broadcast %cst_17 : f32 to vector<1x1x256xf32>
    %54 = vector.broadcast %cst_18 : f32 to vector<1x1x256xf32>
    %55 = arith.select %52, %53, %54 : vector<1x1x256xi1>, vector<1x1x256xf32>
    %56 = vector.broadcast %55 : vector<1x1x256xf32> to vector<1x4x256xf32>
    %57 = arith.mulf %56, %50 : vector<1x4x256xf32>
    %58 = arith.addf %49, %57 : vector<1x4x256xf32>
    %cst_19 = arith.constant 9.99999996E-13 : f32
    %59 = vector.broadcast %cst_19 : f32 to vector<1x4x256xf32>
    %60 = arith.addf %58, %59 : vector<1x4x256xf32>
    %61 = math.sqrt %60 : vector<1x4x256xf32>
    %c0_20 = arith.constant 0 : index
    %c0_21 = arith.constant 0 : index
    %c0_22 = arith.constant 0 : index
    %62 = vector.load %arg3[%c0_20, %c0_21, %c0_22] : memref<1x4x256xf32, #tpu.memory_space<vmem>>, vector<1x4x256xf32>
    tpu.vector_store %arg3[%c0_20, %c0_21, %c0_22], %61 {strides = array<i32>} : memref<1x4x256xf32, #tpu.memory_space<vmem>>, vector<1x4x256xf32>,
    return
  }
  func.func @transform_0(%arg0: i32, %arg1: i32) -> (i32, i32, i32) {
    %c0_i32 = arith.constant 0 : i32
    %c0_i32_0 = arith.constant 0 : i32
    return %arg0, %arg1, %c0_i32 : i32, i32, i32
  }
  func.func @transform_1(%arg0: i32, %arg1: i32) -> (i32, i32, i32) {
    %c0_i32 = arith.constant 0 : i32
    %c0_i32_0 = arith.constant 0 : i32
    return %arg0, %arg1, %c0_i32 : i32, i32, i32
  }
}

</mosaic_0001>

<bundles_post_ra>
// kernel: tpu_custom_call.1
= control target key start
LH: loop header
LB: loop body
LE: loop exit
PB: predicated region body
PF: predicated region fallthrough
CT: control target
= control target key end

     0   :  { %6 = vsyncpa [#allocation3], 0  ;;  %s763_s0 = inlined_call_operand.hbm [shape: f32[2,4,256], index: 0, kind: input, shape index: {}]   ;;  %s764_s1 = inlined_call_operand.hbm [shape: f32[2,4,256], index: 1, kind: output, shape index: {}]  }
   0x1   :  { %8 = vsyncpa [#allocation3 + $0x1], 0 }
   0x2   :  { %9 = vsyncpa [#allocation4], 0 }
   0x3   :  { %11 = vsyncpa [#allocation4 + $0x1], 0  ;;  %s587_s6 = smov 0   ;;  %s589_s7 = smov 0  }
   0x4   :  { %s591_s8 = smov 0   ;;  %s593_s9 = smov 0  }
   0x5   :  { %s595_s10 = smov 0   ;;  %s597_s11 = smov 0  }
   0x6 LB: > { %s370_s12 = sadd.s32 4294967295, %s568_s11   ;;  %s371_s13 = sadd.s32 4294967294, %s568_s11   ;;  %s568_s11 = sphi %s597_s11, %s17_s11   ;;  %s564_s10 = sphi %s595_s10, %s780_s10   ;;  %s560_s9 = sphi %s593_s9, %s779_s9   ;;  %s556_s8 = sphi %s591_s8, %s778_s8   ;;  %s552_s7 = sphi %s589_s7, %s777_s7   ;;  %s548_s6 = sphi %s587_s6, %s776_s6  }
   0x7   : > { %s29_s14 = sadd.s32 1, %s564_s10  ;;  %s38_s15 = sadd.s32 1, %s556_s8 }
   0x8   : > { %p31_p0 = scmp.ge.s32.totalorder %s29_s14, 2  ;;  %p45_p1 = scmp.ne.s32.totalorder %s556_s8, %s552_s7 }
   0x9   : > { %p46_p2 = scmp.eq.s32.totalorder %s568_s11, 0  ;;  %p51_p3 = scmp.ne.s32.totalorder %s552_s7, %s548_s6 }
   0xa   : > { %s782_s14 = smov (%p31_p0, %s29_s14), 0  ;;  %p52_p5 = scmp.eq.s32.totalorder %s370_s12, 0 }
   0xb   : > { %p628_p4 = por %p46_p2, %p45_p1  ;;  %s33_s17 = ssub.s32 %s564_s10, %s782_s14 }
   0xc   : > { %p77_p6 = scmp.eq.s32.totalorder %s370_s12, 1  ;;  %p36_p7 = scmp.eq.s32.totalorder %s33_s17, 0 }
   0xd   : > { %p634_p8 = por %p52_p5, %p51_p3  ;;  %p83_p10 = scmp.eq.s32.totalorder %s371_s13, 1 }
   0xe   : > { %p638_p9 = por %p77_p6, %p45_p1  ;;  %p399_p13 = scmp.lt.s32.totalorder %s568_s11, 2 }
   0xf   : > { %s643_s20 = scalar_select %p36_p7, %s556_s8, %s38_s15  }
  0x10   : > { %s768_s19 = scalar_select %p638_p9, 1, 0 }
  0x11   : > { %p645_p11 = por %p83_p10, %p51_p3  ;;  %s103_s22 = sand.u32 1, %s556_s8  }
  0x12   : > { %s374_s23 = sshll.u32 %s103_s22, 3  ;;  %s385_s24 = sshll.u32 %s564_s10, 7 }
  0x13   : > { %s769_s21 = scalar_select %p645_p11, 1, 0 }
  0x14   : > { %s656_s27 = scalar_lea.hbm %s763_s0, %s385_s24  ;;  %s107_s28 = scalar_lea.vmem [#allocation2], %s374_s23 }
  0x15   : > { %s117_s29 = sshll.u32 %s107_s28, 4  ;;  %p662_p0 = pnand %p399_p13, %p628_p4  ;;  %s658_s29 = int_to_ptr.vmem [resolvable:$true] %s117_s29 }
  0x16   : > { %s104_s2 = scalar_lea.sflag [#allocation3], %s103_s22  ;;  %s456_s3 = scalar_lea.hbm %s656_s27, 128 }
  0x17   : > { %p457_p3 = scmp.ne.s32.totalorder %s656_s27, %s456_s3  ;;  %p458_p5 = pneg %p662_p0 }
  0x18   : > { %s461_s12 = scalar_lea.hbm %s763_s0, 256  ;;  %p462_p4 = scmp.lt.u32.totalorder %s656_s27, %s763_s0 }
  0x19   : > { %p459_p6 = pnand %p458_p5, %p457_p3  ;;  %p463_p10 = scmp.lt.u32.totalorder %s461_s12, %s456_s3 }
  0x1a   : > { %p465_p12 = scmp.lt.u32.totalorder %s456_s3, %s656_s27 }
  0x1b   : > { %p460_p7 = pneg %p459_p6  ;;  %p464_p13 = por %p463_p10, %p462_p4 }
  0x1d   : > { %p466_p1 = por %p465_p12, %p464_p13 }
  0x1f   : > { %p467_p2 = pnand %p466_p1, %p460_p7 }
  0x21   : > { %470 = shalt.err (!%p467_p2)
}
  0x22   : > { %s471_s16 = scalar_lea.vmem %s658_s29, 128  ;;  %s570_s17 = smov [#allocation2]  }
  0x23   : > { %p472_p3 = scmp.ne.s32.totalorder %s658_s29, %s471_s16  ;;  %s476_s22 = sshll.u32 %s570_s17, 4  ;;  %s477_s22 = int_to_ptr.vmem [resolvable:$false] %s476_s22 }
  0x24   : > { %s478_s23 = scalar_lea.vmem %s477_s22, 256  ;;  %p479_p9 = scmp.lt.s32.totalorder %s658_s29, %s477_s22 }
  0x25   : > { %p474_p6 = pnand %p472_p3, %p458_p5  ;;  %p480_p4 = scmp.lt.s32.totalorder %s478_s23, %s471_s16 }
  0x27   : > { %p475_p11 = pneg %p474_p6  ;;  %p481_p10 = por %p480_p4, %p479_p9 }
  0x29   : > { %p482_p12 = pnand %p481_p10, %p475_p11 }
  0x2b   : > { %485 = shalt.err (!%p482_p12)
}
  0x2c   : > { %394 = dma.hbm_to_vmem [thread:$0]  (!%p662_p0), %s656_s27, 128, %s658_s29, %s104_s2  }
  0x2d   : > { %p771_p1 = scmp.lt.s32.totalorder %s568_s11, 3  ;;  %p772_p2 = scmp.ge.s32.totalorder %s568_s11, 1 }
  0x2f   : > { %p123_p5 = pnand %p772_p2, %p771_p1 }
  0x30   : > { %s698_s24 = sand.u32 (!%p123_p5), 1, %s552_s7  }
  0x31   : > { %126 = sbr.rel (%p123_p5) target bundleno = 347 (0x15b), region = 24  ;;  %s378_s25 = sshll.u32 (!%p123_p5), %s698_s24, 3 }
  0x32   : > { %s129_s26 = scalar_lea.sflag (!%p123_p5), [#allocation3], %s698_s24  ;;  %s132_s28 = scalar_lea.vmem (!%p123_p5), [#allocation2], %s378_s25 }
  0x38   : > { %539 = dma.done.wait (%p634_p8), %s129_s26, 128  }
  0x39   : > { %541 = vsyncadd (%p634_p8), %s129_s26, 4294967168  ;;  %v151_v0 = vld [vmem:[%s132_s28] sm:$0xff]  ;;  %s571_s27 = smov 127   ;;  %s572_s29 = smov 1   ;;  %v153_v3 = vlaneseq  ;;  %v573_v10 = vmov 0.0  }
  0x3a   : > { %v152_v1 = vmul.f32 %v151_v0, %v151_v0  ;;  %s574_s18 = smov 16   ;;  %s575_s30 = smov 112  }
  0x3b   : > { %v154_v4 = vand.u32 127, %v153_v3  ;;  %s386_s2 = sshll.u32 %s560_s9, 7  ;;  %s150_s3 = scalar_lea.vmem [#allocation5], %s378_s25 }
  0x3c   : > { %202 = vrot.lane.b32.xlu1 %v152_v1, %s571_s27  ;;  %184 = vrot.lane.b32.xlu0 %v152_v1, %s572_s29  ;;  %v182_v2 = vcombine.high %v152_v1, %v152_v1  ;;  %v180_v17 = vmul.f32 0.5, %v152_v1  ;;  %s286_s4 = sshll.u32 %s150_s3, 4  ;;  %s714_s13 = scalar_lea.hbm %s764_s1, %s386_s2  ;;  %s716_s4 = int_to_ptr.vmem [resolvable:$true] %s286_s4 }
  0x3d   : > { %v155_v5 = vadd.s32 128, %v154_v4  ;;  %v160_v6 = vand.u32 15, %v154_v4  ;;  %vm206_vm4 = vcmp.lt.s32.totalorder %v154_v4, 127  ;;  %vm188_vm5 = vcmp.lt.s32.totalorder %v154_v4, 1  ;;  %s270_s9 = scalar_lea.sflag [#allocation4], %s698_s24  ;;  %s486_s15 = scalar_lea.vmem %s716_s4, 128 }
  0x3e   : > { %vm231_vm6 = vcmp.ge.s32.totalorder %v154_v4, 16  ;;  %vm228_vm7 = vcmp.lt.s32.totalorder %v154_v4, 16  ;;  %vm246_vm9 = vcmp.lt.s32.totalorder %v154_v4, 112  ;;  %p487_p8 = scmp.ne.s32.totalorder %s716_s4, %s486_s15  ;;  %p773_p9 = scmp.ne.s32.totalorder %s768_s19, 0 }
  0x3f   : > { %v167_v7 = vand.u32 15, %v155_v5  ;;  %vm209_vm0 = vcmp.lt.s32.totalorder %v160_v6, 15  ;;  %vm191_vm2 = vcmp.ge.s32.totalorder %v160_v6, 1  ;;  %v233_v32 = vsel %vm231_vm6, 0.25, %v573_v10  ;;  %s576_s16 = smov [#allocation5]  }
  0x40   : > { %204 = vrot.lane.b32.xlu1 %v182_v2, %s571_s27  ;;  %186 = vrot.lane.b32.xlu0 %v182_v2, %s572_s29  ;;  %v211_v11 = vsel %vm209_vm0, 0.25, %v573_v10  ;;  %v193_v13 = vsel %vm191_vm2, 0.25, %v573_v10  ;;  %vm250_vm8 = vcmp.lt.s32.totalorder %v155_v5, 240  ;;  %p488_p11 = pnand %p487_p8, %p773_p9  ;;  %s490_s17 = sshll.u32 %s576_s16, 4  ;;  %s491_s17 = int_to_ptr.vmem [resolvable:$false] %s490_s17 }
  0x41   : > { %vm210_vm1 = vcmp.lt.s32.totalorder %v167_v7, 15  ;;  %vm192_vm3 = vcmp.ge.s32.totalorder %v167_v7, 1  ;;  %v252_v38 = vsel %vm250_vm8, 0.25, %v573_v10  ;;  %s492_s22 = scalar_lea.vmem %s491_s17, 256  ;;  %p493_p7 = scmp.lt.s32.totalorder %s716_s4, %s491_s17 }
  0x42   : > { %v212_v12 = vsel %vm210_vm1, 0.25, %v573_v10  ;;  %v194_v14 = vsel %vm192_vm3, 0.25, %v573_v10  ;;  %p489_p0 = pneg %p488_p11  ;;  %p494_p13 = scmp.lt.s32.totalorder %s492_s22, %s486_s15 }
  0x44   : > { %p495_p3 = por %p494_p13, %p493_p7 }
  0x46   : > { %p496_p6 = pnand %p495_p3, %p489_p0 }
  0xae   : > { %v203_v8 = vpop.permute.xlu1 %202  ;;  %v185_v9 = vpop.permute.xlu0 %184 }
  0xb2   : > { %v205_v15 = vpop.permute.xlu1 %204  ;;  %v187_v16 = vpop.permute.xlu0 %186 }
  0xb3   : > { %v207_v18 = vsel %vm206_vm4, %v203_v8, %v205_v15  ;;  %v208_v19 = vsel %vm206_vm4, %v205_v15, %v203_v8  ;;  %v189_v20 = vsel %vm188_vm5, %v185_v9, %v187_v16  ;;  %v190_v21 = vsel %vm188_vm5, %v187_v16, %v185_v9 }
  0xb4   : > { %v213_v22 = vmul.f32 %v211_v11, %v207_v18  ;;  %v214_v23 = vmul.f32 %v212_v12, %v208_v19  ;;  %v195_v24 = vmul.f32 %v193_v13, %v190_v21  ;;  %v196_v25 = vmul.f32 %v194_v14, %v189_v20 }
  0xb6   : > { %v199_v26 = vcombine.low %v195_v24, %v196_v25  ;;  %v217_v27 = vcombine.low %v213_v22, %v214_v23 }
  0xb8   : > { %v201_v28 = vadd.f32 %v199_v26, %v180_v17 }
  0xba   : > { %v219_v29 = vadd.f32 %v217_v27, %v201_v28 }
  0xbc   : > { %224 = vrot.lane.b32.xlu0 %v219_v29, %s574_s18  ;;  %v222_v30 = vcombine.high %v219_v29, %v219_v29  ;;  %v220_v44 = vmul.f32 0.5, %v219_v29 }
  0xbe   : > { %226 = vrot.lane.b32.xlu1 %v222_v30, %s574_s18 }
  0xc0   : > { %242 = vrot.lane.b32.xlu0 %v219_v29, %s575_s30 }
  0xc2   : > { %244 = vrot.lane.b32.xlu1 %v222_v30, %s575_s30 }
 0x12e   : > { %v225_v31 = vpop.permute.xlu0 %224 }
 0x130   : > { %v227_v33 = vpop.permute.xlu1 %226 }
 0x131   : > { %v229_v34 = vsel %vm228_vm7, %v225_v31, %v227_v33  ;;  %v230_v35 = vsel %vm228_vm7, %v227_v33, %v225_v31 }
 0x132   : > { %v235_v36 = vmul.f32 %v233_v32, %v230_v35  ;;  %v236_v37 = vmul.f32 0.25, %v229_v34  ;;  %v243_v40 = vpop.permute.xlu0 %242 }
 0x134   : > { %v239_v39 = vcombine.low %v235_v36, %v236_v37  ;;  %v245_v41 = vpop.permute.xlu1 %244 }
 0x135   : > { %v247_v42 = vsel %vm246_vm9, %v243_v40, %v245_v41  ;;  %v248_v43 = vsel %vm246_vm9, %v245_v41, %v243_v40 }
 0x136   : > { %v253_v45 = vmul.f32 0.25, %v247_v42  ;;  %v254_v46 = vmul.f32 %v252_v38, %v248_v43  ;;  %v241_v47 = vadd.f32 %v239_v39, %v220_v44 }
 0x138   : > { %v257_v48 = vcombine.low %v253_v45, %v254_v46 }
 0x13a   : > { %v259_v49 = vadd.f32 %v257_v48, %v241_v47 }
 0x13c   : > { %v260_v50 = vadd.f32 1e-12, %v259_v49 }
 0x13e   : > { %454 = vrsqrt.f32 %v260_v50  ;;  %vm263_vm10 = vcmp.eq.f32.partialorder %v260_v50, inf  ;;  %v266_v53 = vand.u32 2147483648, %v260_v50  ;;  %vm265_vm11 = vcmp.eq.f32.partialorder %v260_v50, 0.0 }
 0x148   : > { %v455_v51 = vpop.eup %454 }
 0x149   : > { %v262_v52 = vmul.f32 %v455_v51, %v260_v50 }
 0x14b   : > { %v264_v54 = vsel %vm263_vm10, %v260_v50, %v262_v52 }
 0x14c   : > { %v267_v55 = vsel %vm265_vm11, %v266_v53, %v264_v54 }
 0x14d   : > { %268 = vst [vmem:[%s150_s3] sm:$0xff] %v267_v55 }
 0x14e   : > { %499 = shalt.err (!%p496_p6)
}
 0x14f   : > { %s500_s23 = scalar_lea.hbm %s714_s13, 128  ;;  %s504_s26 = scalar_lea.hbm %s764_s1, 256 }
 0x150   : > { %p501_p4 = scmp.ne.s32.totalorder %s714_s13, %s500_s23  ;;  %p505_p1 = scmp.lt.u32.totalorder %s714_s13, %s764_s1 }
 0x151   : > { %p506_p2 = scmp.lt.u32.totalorder %s504_s26, %s500_s23  ;;  %p508_p8 = scmp.lt.u32.totalorder %s500_s23, %s714_s13 }
 0x152   : > { %p502_p10 = pnand %p501_p4, %p773_p9 }
 0x153   : > { %p507_p5 = por %p506_p2, %p505_p1 }
 0x154   : > { %p503_p12 = pneg %p502_p10 }
 0x155   : > { %p509_p11 = por %p508_p8, %p507_p5 }
 0x157   : > { %p510_p0 = pnand %p509_p11, %p503_p12 }
 0x159   : > { %513 = shalt.err (!%p510_p0)
}
 0x15a   : > { %389 = dma.vmem_to_hbm [thread:$0]  (%p773_p9), %s716_s4, 128, %s714_s13, %s270_s9  }
 0x15b PF: > { %s298_s29 = sand.u32 1, %s548_s6   ;;  %p774_p7 = scmp.ne.s32.totalorder %s769_s21, 0 }
 0x15c   : > { %p775_p13 = scmp.ge.s32.totalorder %s568_s11, 2  ;;  %s299_s18 = scalar_lea.sflag [#allocation4], %s298_s29 }
 0x15e   : > { %p396_p3 = pnand %p775_p13, %p774_p7 }
 0x160   : > { %543 = dma.done.wait (!%p396_p3), %s299_s18, 128  }
 0x161   : > { %545 = vsyncadd (!%p396_p3), %s299_s18, 4294967168  ;;  %s17_s11 = sadd.s32 1, %s568_s11   ;;  %s776_s6 = smov %s552_s7 }
 0x162   : > { %p14_p6 = scmp.ge.s32.totalorder %s17_s11, 4   ;;  %s777_s7 = smov %s556_s8 }
 0x163   : > { %s778_s8 = smov %s643_s20  ;;  %s779_s9 = smov %s564_s10 }
 0x164   : > { %s780_s10 = smov %s782_s14  ;;  %16 = sbr.rel (!%p14_p6) target bundleno = 6 (0x6), region = 69 }
 0x16b   :  { %304 = vsyncpa [#allocation3], 1 }
 0x16c   :  { %306 = vsyncpa [#allocation3 + $0x1], 1 }
 0x16d   :  { %307 = vsyncpa [#allocation4], 1 }
 0x16e   :  { %309 = vsyncpa [#allocation4 + $0x1], 1 }

</bundles_post_ra>
